<compile_context>
chip_gen: v6e
topology: v6e:2x2x1
jax: 0.10.0
libtpu: 0.0.40
codegen_flags: <defaults>
</compile_context>

<pallas_src>
import functools

import jax
import jax.numpy as jnp
from jax.experimental import pallas as pl
from jax.experimental.pallas import tpu as pltpu


# ---------------------------------------------------------------------------
# Kernels
# ---------------------------------------------------------------------------

def _mlp_kernel_cn(x_ref, w1_ref, p_ref, b2_ref, o_ref):
    """Lane-dense path: x (29, TB), output (1, TB)."""
    x = x_ref[...].astype(jnp.bfloat16)                               # (29, TB)
    # Layer 1 on the MXU: (16,29)bf16 @ (29,TB)bf16 -> (16,TB) f32.
    h = jnp.dot(w1_ref[...], x, preferred_element_type=jnp.float32)   # (16, TB)
    p = p_ref[...]                                                    # (16, 2) f32
    h = jnp.maximum(h + p[:, 0:1], 0.0)                               # bias + ReLU (VPU)
    # Layer 2 on VPU + XLU sublane-reduce (avoids a 1-column MXU matmul).
    y = jnp.sum(h * p[:, 1:2], axis=0, keepdims=True) + b2_ref[0, 0]  # (1, TB)
    o_ref[...] = jax.nn.sigmoid(y).astype(o_ref.dtype)                # EUP


def _mlp_kernel_rm(x_ref, w1_ref, p_ref, b2_ref, o_ref):
    """Row-major (PyTorch-parity) path: x (TB, 29) f32, output (TB, 1)."""
    # Cast to bf16 in-kernel (HBM read stays whatever dtype the caller gave).
    # For real-valued features where bf16 logit error matters, drop this cast.
    x = x_ref[...].astype(jnp.bfloat16)                               # (TB, 29)
    # Contract on the feature axis of both operands: (TB,29) . (16,29) -> (TB,16).
    h = jax.lax.dot_general(
        x, w1_ref[...],
        dimension_numbers=(((1,), (1,)), ((), ())),
        preferred_element_type=jnp.float32,
    )                                                                 # (TB, 16)
    p = p_ref[...]                                                    # (2, 16) f32
    h = jnp.maximum(h + p[0:1, :], 0.0)                               # bias + ReLU
    y = jnp.sum(h * p[1:2, :], axis=1, keepdims=True) + b2_ref[0, 0]  # (TB, 1)
    o_ref[...] = jax.nn.sigmoid(y).astype(o_ref.dtype)


# ---------------------------------------------------------------------------
# Tile selection
# ---------------------------------------------------------------------------

def _pick_batch_tile(batch, tb_max):
    """Batch-tile size: big enough to amortize the ~0.35 us/step overhead,
    multiple of 128 (lane width), and >= 2 tiles whenever batch > 256 so the
    'parallel' grid axis actually feeds both v7x TensorCores."""
    tb_max = max(128, (tb_max // 128) * 128)
    if batch <= 256:
        return batch                       # single full-extent tile
    half = -(-batch // 2)                  # cdiv(batch, 2)
    half = ((half + 127) // 128) * 128     # round up to a lane multiple
    return min(tb_max, half)


def _param_bytes(w1_bf):
    return 16 * 29 * w1_bf.dtype.itemsize + 16 * 2 * 4 + 4


_COMPILER_PARAMS = pltpu.CompilerParams(
    dimension_semantics=("parallel",),      # shard batch tiles across TCs (v7x)
    vmem_limit_bytes=32 * 1024 * 1024,      # <= v7x 64 MiB physical; >= footprint
)


# ---------------------------------------------------------------------------
# Wrappers
# ---------------------------------------------------------------------------

def simple_net_forward_cn(x_cn, w1, b1, w2, b2, *, tb_max=32768,
                          out_dtype=jnp.float32):
    """Lane-dense entry point (recommended).

    x_cn: (29, B) activations ("CN" layout), ideally bfloat16 (produced
          upstream in this layout -- no transpose pass is done here).
    w1:   (16, 29) fc1 weight (PyTorch orientation), f32 or bf16.
    b1:   (16,)    fc1 bias.
    w2:   (1, 16)  fc2 weight (PyTorch orientation).
    b2:   (1,)     fc2 bias.
    Returns (1, B) sigmoid outputs in out_dtype.
    """
    c_in, batch = x_cn.shape
    assert c_in == 29, "expected 29 input features"

    w1_bf = w1.astype(jnp.bfloat16)
    # Pack b1 and the fc2 weight column into one (16,2) f32 VMEM-resident block.
    p_col = jnp.concatenate(
        [b1.reshape(16, 1), w2.reshape(16, 1)], axis=1).astype(jnp.float32)
    b2_s = jnp.reshape(b2, (1, 1)).astype(jnp.float32)

    tb = _pick_batch_tile(batch, tb_max)
    grid = (pl.cdiv(batch, tb),)

    out_itemsize = jnp.dtype(out_dtype).itemsize
    flops = 2 * batch * (29 * 16 + 16)
    bytes_accessed = (batch * 29 * x_cn.dtype.itemsize
                      + batch * out_itemsize + _param_bytes(w1_bf))

    return pl.pallas_call(
        _mlp_kernel_cn,
        out_shape=jax.ShapeDtypeStruct((1, batch), out_dtype),
        grid=grid,
        in_specs=[
            # Streamed, double-buffered, lane-dense batch tile of x.
            pl.BlockSpec((29, tb), lambda i: (0, i)),
            # Params: constant block index -> VMEM-resident, no re-DMA per tile.
            pl.BlockSpec((16, 29), lambda i: (0, 0)),
            pl.BlockSpec((16, 2), lambda i: (0, 0)),
            # Scalar bias in SMEM.
            pl.BlockSpec(memory_space=pltpu.MemorySpace.SMEM),
        ],
        out_specs=pl.BlockSpec((1, tb), lambda i: (0, i)),
        compiler_params=_COMPILER_PARAMS,
        cost_estimate=pl.CostEstimate(
            flops=flops, transcendentals=batch, bytes_accessed=bytes_accessed),
    )(x_cn, w1_bf, p_col, b2_s)


def simple_net_forward(x, w1, b1, w2, b2, *, tb_max=32768,
                       out_dtype=jnp.float32):
    """PyTorch-compatible interface: x (B, 29) f32 -> (B, 1).

    Fully fused: x tiles are DMA'd row-major straight into the kernel (no
    separate cast/transpose pass over x).  For peak HBM bandwidth, produce
    activations upstream in (29, B) bf16 and call `simple_net_forward_cn`.
    """
    batch, c_in = x.shape
    assert c_in == 29, "expected 29 input features"

    w1_bf = w1.astype(jnp.bfloat16)
    # Row-packed params: row 0 = b1, row 1 = fc2 weight row.
    p_row = jnp.stack([b1.reshape(16), w2.reshape(16)], axis=0).astype(jnp.float32)
    b2_s = jnp.reshape(b2, (1, 1)).astype(jnp.float32)

    tb = _pick_batch_tile(batch, tb_max)
    grid = (pl.cdiv(batch, tb),)

    out_itemsize = jnp.dtype(out_dtype).itemsize
    flops = 2 * batch * (29 * 16 + 16)
    bytes_accessed = (batch * 29 * x.dtype.itemsize
                      + batch * out_itemsize + _param_bytes(w1_bf))

    return pl.pallas_call(
        _mlp_kernel_rm,
        out_shape=jax.ShapeDtypeStruct((batch, 1), out_dtype),
        grid=grid,
        in_specs=[
            pl.BlockSpec((tb, 29), lambda i: (i, 0)),
            pl.BlockSpec((16, 29), lambda i: (0, 0)),
            pl.BlockSpec((2, 16), lambda i: (0, 0)),
            pl.BlockSpec(memory_space=pltpu.MemorySpace.SMEM),
        ],
        out_specs=pl.BlockSpec((tb, 1), lambda i: (i, 0)),
        compiler_params=_COMPILER_PARAMS,
        cost_estimate=pl.CostEstimate(
            flops=flops, transcendentals=batch, bytes_accessed=bytes_accessed),
    )(x, w1_bf, p_row, b2_s)


# ---------------------------------------------------------------------------
# Params / reference / test
# ---------------------------------------------------------------------------

def init_params(key):
    """PyTorch-shaped params, Linear-default U(-1/sqrt(fan_in), +) init."""
    k1, k2, k3, k4 = jax.random.split(key, 4)
    bound1 = 1.0 / jnp.sqrt(29.0)
    bound2 = 1.0 / jnp.sqrt(16.0)
    w1 = jax.random.uniform(k1, (16, 29), jnp.float32, -bound1, bound1)
    b1 = jax.random.uniform(k2, (16,), jnp.float32, -bound1, bound1)
    w2 = jax.random.uniform(k3, (1, 16), jnp.float32, -bound2, bound2)
    b2 = jax.random.uniform(k4, (1,), jnp.float32, -bound2, bound2)
    return w1, b1, w2, b2


def _reference(x, w1, b1, w2, b2):
    """Pure-JAX reference with the same bf16 quantization of x / fc1.weight
    as the kernels (bit inputs are exact in bf16)."""
    xq = x.astype(jnp.bfloat16).astype(jnp.float32)
    w1q = w1.astype(jnp.bfloat16).astype(jnp.float32)
    h = jnp.maximum(
        jnp.dot(xq, w1q.T, precision=jax.lax.Precision.HIGHEST) + b1[None, :], 0.0)
    y = jnp.dot(h, w2.T, precision=jax.lax.Precision.HIGHEST) + b2[None, :]
    return jax.nn.sigmoid(y)   # (B, 1)


if __name__ == "__main__":
    key = jax.random.PRNGKey(0)
    kx0, kx1, kp = jax.random.split(key, 3)
    w1, b1, w2, b2 = init_params(kp)

    # Smoke test: row-major PyTorch-compatible path, single full-extent tile.
    B0 = 8
    x0 = jax.random.bernoulli(kx0, 0.5, (B0, 29)).astype(jnp.float32)
    out0 = simple_net_forward(x0, w1, b1, w2, b2)
    jax.block_until_ready(out0)
    ref0 = _reference(x0, w1, b1, w2, b2)
    assert out0.shape == (B0, 1)
    assert jnp.allclose(out0, ref0, atol=2e-5), "row-major mismatch (B=8)"

    # Multi-tile test: exercises the batch grid (2 tiles of 256 for B=300),
    # double buffering, the partial/masked final block, and the >=2-tile picker.
    B1 = 300
    x1 = jax.random.bernoulli(kx1, 0.5, (B1, 29)).astype(jnp.float32)
    ref1 = _reference(x1, w1, b1, w2, b2)

    out1 = simple_net_forward(x1, w1, b1, w2, b2)
    jax.block_until_ready(out1)
    assert out1.shape == (B1, 1)
    assert jnp.allclose(out1, ref1, atol=2e-5), "row-major mismatch (B=300)"

    # Lane-dense CN path (recommended production layout).  The transpose here
    # is test-only data prep; in production the (29,B) bf16 layout should be
    # produced upstream.
    x1_cn = jnp.asarray(x1.T, jnp.bfloat16)
    out1_cn = simple_net_forward_cn(x1_cn, w1, b1, w2, b2)
    jax.block_until_ready(out1_cn)
    assert out1_cn.shape == (1, B1)
    assert jnp.allclose(out1_cn.reshape(B1, 1), ref1, atol=2e-5), "CN mismatch"

    print("KERNEL_OK")
</pallas_src>

<mosaic_0001>
module attributes {stable_mosaic.version = 11 : i64} {
  func.func @_mlp_kernel_rm(%arg0: i32, %arg1: memref<8x29xf32, #tpu.memory_space<vmem>>, %arg2: memref<16x29xbf16, #tpu.memory_space<vmem>>, %arg3: memref<2x16xf32, #tpu.memory_space<vmem>>, %arg4: memref<1x1xf32, #tpu.memory_space<smem>>, %arg5: memref<8x1xf32, #tpu.memory_space<vmem>>) attributes {dimension_semantics = [#tpu.dimension_semantics<parallel>], iteration_bounds = array<i64: 1>, scalar_prefetch = 0 : i64, scratch_operands = 0 : i64, tpu.core_type = #tpu.core_type<tc>, window_params = [{transform_indices = @transform_0, window_bounds = array<i64: 8, 29>}, {pipeline_mode = #tpu.pipeline_mode<synchronous>, transform_indices = @transform_1, window_bounds = array<i64: 16, 29>}, {pipeline_mode = #tpu.pipeline_mode<synchronous>, transform_indices = @transform_2, window_bounds = array<i64: 2, 16>}, {transform_indices = @transform_3, window_bounds = array<i64: 1, 1>}, {transform_indices = @transform_4, window_bounds = array<i64: 8, 1>}]} {
    %c0 = arith.constant 0 : index
    %c0_0 = arith.constant 0 : index
    %0 = vector.load %arg1[%c0, %c0_0] : memref<8x29xf32, #tpu.memory_space<vmem>>, vector<8x29xf32>
    %1 = arith.truncf %0 : vector<8x29xf32> to vector<8x29xbf16>
    %c0_1 = arith.constant 0 : index
    %c0_2 = arith.constant 0 : index
    %2 = vector.load %arg2[%c0_1, %c0_2] : memref<16x29xbf16, #tpu.memory_space<vmem>>, vector<16x29xbf16>
    %cst = arith.constant dense<0.000000e+00> : vector<8x16xf32>
    %3 = tpu.matmul %1, %2, %cst {dimension_numbers = #tpu.dot_dimension_numbers<[1], [1], [0], [0], [0, 0, 1, 0], [], []>} : vector<8x29xbf16>, vector<16x29xbf16>, vector<8x16xf32> -> vector<8x16xf32>
    %c0_3 = arith.constant 0 : index
    %c0_4 = arith.constant 0 : index
    %4 = vector.load %arg3[%c0_3, %c0_4] : memref<2x16xf32, #tpu.memory_space<vmem>>, vector<2x16xf32>
    %5 = vector.extract_strided_slice %4 {offsets = [0, 0], sizes = [1, 16], strides = [1, 1]} : vector<2x16xf32> to vector<1x16xf32>
    %6 = vector.broadcast %5 : vector<1x16xf32> to vector<8x16xf32>
    %7 = arith.addf %3, %6 : vector<8x16xf32>
    %cst_5 = arith.constant 0.000000e+00 : f32
    %8 = vector.broadcast %cst_5 : f32 to vector<8x16xf32>
    %9 = arith.maximumf %7, %8 : vector<8x16xf32>
    %10 = vector.extract_strided_slice %4 {offsets = [1, 0], sizes = [1, 16], strides = [1, 1]} : vector<2x16xf32> to vector<1x16xf32>
    %11 = vector.broadcast %10 : vector<1x16xf32> to vector<8x16xf32>
    %12 = arith.mulf %9, %11 : vector<8x16xf32>
    %cst_6 = arith.constant dense<0.000000e+00> : vector<8xf32>
    %13 = vector.multi_reduction <add>, %12, %cst_6 [1] : vector<8x16xf32> to vector<8xf32>
    %14 = vector.shape_cast %13 : vector<8xf32> to vector<8x1xf32>
    %c0_7 = arith.constant 0 : index
    %c0_8 = arith.constant 0 : index
    %15 = memref.load %arg4[%c0_7, %c0_8] : memref<1x1xf32, #tpu.memory_space<smem>>
    %16 = vector.broadcast %15 : f32 to vector<8x1xf32>
    %17 = arith.addf %14, %16 : vector<8x1xf32>
    %18 = arith.negf %17 : vector<8x1xf32>
    %19 = math.exp %18 : vector<8x1xf32>
    %cst_9 = arith.constant 1.000000e+00 : f32
    %20 = vector.broadcast %cst_9 : f32 to vector<8x1xf32>
    %21 = arith.addf %20, %19 : vector<8x1xf32>
    %22 = arith.divf %20, %21 : vector<8x1xf32>
    %c0_10 = arith.constant 0 : index
    %c0_11 = arith.constant 0 : index
    %23 = vector.load %arg5[%c0_10, %c0_11] : memref<8x1xf32, #tpu.memory_space<vmem>>, vector<8x1xf32>
    tpu.vector_store %arg5[%c0_10, %c0_11], %22 {strides = array<i32>} : memref<8x1xf32, #tpu.memory_space<vmem>>, vector<8x1xf32>,
    return
  }
  func.func @transform_0(%arg0: i32) -> (i32, i32) {
    %c0_i32 = arith.constant 0 : i32
    %c0_i32_0 = arith.constant 0 : i32
    return %arg0, %c0_i32 : i32, i32
  }
  func.func @transform_1(%arg0: i32) -> (i32, i32) {
    %c0_i32 = arith.constant 0 : i32
    %c0_i32_0 = arith.constant 0 : i32
    %c0_i32_1 = arith.constant 0 : i32
    return %c0_i32, %c0_i32_0 : i32, i32
  }
  func.func @transform_2(%arg0: i32) -> (i32, i32) {
    %c0_i32 = arith.constant 0 : i32
    %c0_i32_0 = arith.constant 0 : i32
    %c0_i32_1 = arith.constant 0 : i32
    return %c0_i32, %c0_i32_0 : i32, i32
  }
  func.func @transform_3(%arg0: i32) -> (i32, i32) {
    %c0_i32 = arith.constant 0 : i32
    %c0_i32_0 = arith.constant 0 : i32
    %c0_i32_1 = arith.constant 0 : i32
    return %c0_i32, %c0_i32_0 : i32, i32
  }
  func.func @transform_4(%arg0: i32) -> (i32, i32) {
    %c0_i32 = arith.constant 0 : i32
    %c0_i32_0 = arith.constant 0 : i32
    return %arg0, %c0_i32 : i32, i32
  }
}

</mosaic_0001>

<bundles_post_ra>
// kernel: tpu_custom_call.1
= control target key start
LH: loop header
LB: loop body
LE: loop exit
PB: predicated region body
PF: predicated region fallthrough
CT: control target
= control target key end

     0   :  { %10 = vsyncpa [#allocation4], 0  ;;  %s245_s0 = inlined_call_operand.hbm [shape: f32[8,29], index: 0, kind: input, shape index: {}]   ;;  %s246_s1 = inlined_call_operand.hbm [shape: bf16[16,29], index: 1, kind: input, shape index: {}]   ;;  %s247_s2 = inlined_call_operand.vmem [shape: f32[2,16], index: 2, kind: input, shape index: {}]   ;;  %s248_s3 = inlined_call_operand.<no memory space> [shape: f32[1,1], index: 3, kind: input, shape index: {}]   ;;  %s249_s4 = inlined_call_operand.vmem [shape: f32[8,1], index: 4, kind: output, shape index: {}]  }
   0x1   :  { %11 = vsyncpa [#allocation6], 0  ;;  %s199_s15 = smov [#allocation3]   ;;  %s200_s17 = smov [#allocation5]  }
   0x2   :  { %s18_s16 = sshll.u32 %s199_s15, 4  ;;  %s27_s18 = sshll.u32 %s200_s17, 4  ;;  %s19_s16 = int_to_ptr.vmem [resolvable:$true] %s18_s16  ;;  %s28_s18 = int_to_ptr.vmem [resolvable:$true] %s27_s18 }
   0x3   :  { %s163_s19 = scalar_lea.vmem %s19_s16, 128  ;;  %p168_p1 = scmp.lt.s32.totalorder %s19_s16, %s19_s16 }
   0x4   :  { %p164_p0 = scmp.ne.s32.totalorder %s19_s16, %s163_s19  ;;  %p169_p2 = scmp.lt.s32.totalorder %s163_s19, %s163_s19 }
   0x6   :  { %p170_p3 = por %p169_p2, %p168_p1 }
   0x8   :  { %p171_p4 = pnand %p170_p3, %p164_p0 }
   0xa   :  { %174 = shalt.err (!%p171_p4)
}
   0xb   :  { %21 = dma.hbm_to_vmem [thread:$0]  %s245_s0, 128, %s19_s16, [#allocation4]  }
   0xc   :  { %s183_s22 = scalar_lea.vmem %s28_s18, 128  ;;  %p188_p6 = scmp.lt.s32.totalorder %s28_s18, %s28_s18 }
   0xd   :  { %p184_p5 = scmp.ne.s32.totalorder %s28_s18, %s183_s22  ;;  %p189_p7 = scmp.lt.s32.totalorder %s183_s22, %s183_s22 }
   0xf   :  { %p190_p8 = por %p189_p7, %p188_p6 }
  0x11   :  { %p191_p9 = pnand %p190_p8, %p184_p5 }
  0x13   :  { %194 = shalt.err (!%p191_p9)
}
  0x14   :  { %s201_s23 = smov 64   ;;  %s202_s24 = smov 4  }
  0x15   :  { %33 = dma.hbm_to_vmem [thread:$0]  %s246_s1, 128, %s28_s18, [#allocation6], %s201_s23, %s201_s23, %s202_s24  }
  0x16   :  { %195 = dma.done.wait [#allocation4], 128  }
  0x17   :  { %196 = vsyncadd [#allocation4], 4294967168 }
  0x18   :  { %197 = dma.done.wait [#allocation6], 128  }
  0x19   :  { %198 = vsyncadd [#allocation6], 4294967168  ;;  %v203_v0 = vmov 0.0   ;;  %vm204_vm0 = vmmov 0   ;;  %vm59_vm1 = vcmask 236544   ;;  %v150_v1 = vld [vmem:[#allocation5] sm:$0xff]   ;;  %v50_v5 = vlaneseq }
  0x1a   :  { %138 = vmatprep.subr.bf16.mxu0 %v203_v0  ;;  %140 = vmatprep.mubr.msk.bf16.mxu0 %vm204_vm0, %v203_v0  ;;  %v64_v2 = vsel %vm59_vm1, %v150_v1, 0  ;;  %v45_v3 = vld [vmem:[#allocation3] sm:$0xff]  ;;  %vm112_vm2 = vcmask 130048   ;;  %v117_v20 = vstv %s248_s3  ;;  %vm125_vm3 = vcmask 7168  }
  0x1b   :  { %139 = vmatpush3.bf16.xpose.msra.mxu0 %v64_v2  ;;  %v46_v4 = vpack.c.bf16 %v45_v3, %v45_v3  ;;  %v51_v6 = vshrl.u32 %v50_v5, 7  ;;  %v49_v8 = vld [vmem:[%s247_s2] sm:$0x3] }
  0x1d   :  { %v52_v7 = vsub.s32 0, %v51_v6  ;;  %v109_v10 = vsub.s32 1, %v51_v6 }
  0x1f   :  { %v53_v9 = vrot.slane %v49_v8, %v52_v7  ;;  %v110_v13 = vrot.slane %v49_v8, %v109_v10 }
  0x22   :  { %141 = vmatmul.mubr.msk.bf16.vlgmr.msra.gmra.mxu0 %vm59_vm1, %v46_v4 }
  0xe2   :  { %v100_v11 = vpop.f32.mrf.mxu0 }
  0xe3   :  { %v101_v12 = vadd.f32 %v100_v11, %v53_v9 }
  0xe4   :  { %v142_v14 = vpop.f32.mrf.mxu0 }
  0xe5   :  { %v106_v15 = vmax.f32 %v101_v12, 0.0 }
  0xe6   :  { %v103_v16 = vpop.f32.mrf.mxu0 }
  0xe7   :  { %v111_v17 = vmul.f32 %v110_v13, %v106_v15 }
  0xe8   :  { %v143_v18 = vpop.f32.mrf.mxu0 }
  0xe9   :  { %v113_v19 = vsel %vm112_vm2, %v111_v17, 0.0 }
  0xea   :  { %114 = vadd.xlane.f32.xlu0 %v113_v19 }
 0x173   :  { %v115_v21 = vpop.xlane.xlu0 %114 }
 0x174   :  { %v118_v22 = vadd.f32 %v117_v20, %v115_v21 }
 0x176   :  { %v135_v23 = vmul.f32 -1.442695, %v118_v22 }
 0x178   :  { %151 = vpow2.f32 %v135_v23 }
 0x185   :  { %v152_v24 = vpop.eup %151 }
 0x186   :  { %v122_v25 = vadd.f32 1.0, %v152_v24 }
 0x188   :  { %153 = vrcp.f32 %v122_v25 }
 0x195   :  { %v154_v26 = vpop.eup %153 }
 0x196   :  { %126 = vst.msk [vmem:[%s249_s4] sm:$0xff] %vm125_vm3, %v154_v26 }
 0x197   :  { %131 = vsyncpa [#allocation4], 1 }
 0x198   :  { %132 = vsyncpa [#allocation6], 1 }

</bundles_post_ra>
